<compile_context>
chip_gen: v7x
topology: tpu7x:2x2x1
jax: 0.10.0
libtpu: 0.0.40
codegen_flags: <defaults>
</compile_context>

<pallas_src>
import functools

import jax
import jax.numpy as jnp
from jax import lax
from jax.experimental import pallas as pl
from jax.experimental.pallas import tpu as pltpu


def _round_up(v, m):
    return ((v + m - 1) // m) * m


def _same_pad_conv_kernel(x_ref, w_ref, b_ref, o_ref, *, K, dilation, tile_L):
    # x_ref: (1, 1, C_in_pad, tile_L + halo)   w_ref: (tile_Co, K*C_in_pad)
    # b_ref: (tile_Co, 1) f32                  o_ref: (1, tile_Co, tile_L)
    x_t = x_ref[0, 0]                               # (C_in_pad, W)
    if K == 1:
        slab = x_t[:, :tile_L]                      # (C_in_pad, tile_L)
    else:
        # Fold the K taps into the contraction dim: K shifted views stacked
        # along sublanes (C_in_pad is 16-aligned, so the concat is tile-aligned).
        slab = jnp.concatenate(
            [x_t[:, k * dilation: k * dilation + tile_L] for k in range(K)],
            axis=0)                                  # (K*C_in_pad, tile_L)
    acc = jnp.dot(w_ref[...], slab, preferred_element_type=jnp.float32)
    o_ref[0] = (acc + b_ref[...]).astype(o_ref.dtype)


def same_pad_conv(x, weight, bias, *, dilation=1, stride=1, groups=1,
                  tile_L=512, compute_dtype=jnp.bfloat16):
    """x: (B, C_in, L); weight: (C_out, C_in, K); bias: (C_out,)."""
    if stride != 1 or groups != 1:
        raise NotImplementedError("Only stride=1, groups=1 supported.")

    B, C_in, L = x.shape
    C_out, _, K = weight.shape

    receptive_field = (K - 1) * dilation + 1
    pad = receptive_field // 2
    remove = 1 if receptive_field % 2 == 0 else 0
    halo = (K - 1) * dilation

    # PyTorch Conv1d (stride=1) output length, then drop `remove` trailing cols.
    L_conv = L + 2 * pad - receptive_field + 1
    L_out = L_conv - remove

    # ---- tiling choices -----------------------------------------------------
    tile_L_eff = _round_up(min(tile_L, _round_up(L_out, 128)), 128)
    L_out_pad = _round_up(L_out, tile_L_eff)
    T = L_out_pad // tile_L_eff
    W = tile_L_eff + halo

    C_in_pad = _round_up(C_in, 16)                  # sublane/packing friendly
    if C_out <= 128:
        tile_Co = _round_up(C_out, 8)
        C_out_pad = tile_Co
    else:
        tile_Co = 128
        C_out_pad = _round_up(C_out, 128)
    n_cb = C_out_pad // tile_Co

    # ---- input re-layout: fused pad + halo + tiling gather (single HBM pass) -
    xc = x.astype(compute_dtype)
    pos = jnp.arange(T)[:, None] * tile_L_eff + jnp.arange(W)[None, :]  # (T, W)
    src = pos - pad
    valid = (src >= 0) & (src < L)
    src_c = jnp.clip(src, 0, L - 1)
    x_g = jnp.where(valid[None, None, :, :], xc[:, :, src_c],
                    jnp.array(0, compute_dtype))    # (B, C_in, T, W)
    x_g = jnp.pad(x_g, ((0, 0), (0, C_in_pad - C_in), (0, 0), (0, 0)))
    x_tiles = jnp.transpose(x_g, (0, 2, 1, 3))      # (B, T, C_in_pad, W)

    # ---- weight/bias re-layout: (C_out_pad, K*C_in_pad), taps folded ---------
    w3 = jnp.transpose(weight, (0, 2, 1))           # (C_out, K, C_in)
    w3 = jnp.pad(w3, ((0, C_out_pad - C_out), (0, 0), (0, C_in_pad - C_in)))
    w2 = w3.reshape(C_out_pad, K * C_in_pad).astype(compute_dtype)
    b2 = jnp.pad(bias, (0, C_out_pad - C_out)).astype(jnp.float32)
    b2 = b2.reshape(C_out_pad, 1)

    kernel = functools.partial(
        _same_pad_conv_kernel, K=K, dilation=dilation, tile_L=tile_L_eff)

    out_padded = pl.pallas_call(
        kernel,
        out_shape=jax.ShapeDtypeStruct((B, C_out_pad, L_out_pad), x.dtype),
        grid_spec=pltpu.PrefetchScalarGridSpec(
            num_scalar_prefetch=0,
            grid=(B, T, n_cb),
            in_specs=[
                pl.BlockSpec((1, 1, C_in_pad, W), lambda b, t, c: (b, t, 0, 0)),
                pl.BlockSpec((tile_Co, K * C_in_pad), lambda b, t, c: (c, 0)),
                pl.BlockSpec((tile_Co, 1), lambda b, t, c: (c, 0)),
            ],
            out_specs=pl.BlockSpec((1, tile_Co, tile_L_eff),
                                   lambda b, t, c: (b, c, t)),
        ),
        compiler_params=pltpu.CompilerParams(
            dimension_semantics=("parallel", "parallel", "parallel"),
            vmem_limit_bytes=32 * 1024 * 1024,
        ),
    )(x_tiles, w2, b2)

    return out_padded[:, :C_out, :L_out]


def _reference(x, weight, bias, *, dilation=1):
    """Pure-JAX reference matching PyTorch SamePadConv.forward."""
    K = weight.shape[-1]
    receptive_field = (K - 1) * dilation + 1
    pad = receptive_field // 2
    remove = 1 if receptive_field % 2 == 0 else 0
    out = lax.conv_general_dilated(
        x, weight,
        window_strides=(1,),
        padding=[(pad, pad)],
        rhs_dilation=(dilation,),
        dimension_numbers=("NCH", "OIH", "NCH"),
    ) + bias.reshape(1, -1, 1)
    if remove > 0:
        out = out[:, :, :-remove]
    return out


if __name__ == "__main__":
    # Small shapes consistent with the module's forward (Conv1d on (B, C, L)).
    B, C_in, C_out, L = 2, 4, 6, 16
    kernel_size, dilation = 3, 2

    key = jax.random.PRNGKey(0)
    kx, kw, kb = jax.random.split(key, 3)

    x = jax.random.normal(kx, (B, C_in, L), dtype=jnp.float32)
    # Deterministic param init (PyTorch-style uniform bound 1/sqrt(fan_in)).
    bound = 1.0 / jnp.sqrt(C_in * kernel_size)
    weight = jax.random.uniform(
        kw, (C_out, C_in, kernel_size), dtype=jnp.float32,
        minval=-bound, maxval=bound)
    bias = jax.random.uniform(
        kb, (C_out,), dtype=jnp.float32, minval=-bound, maxval=bound)

    ref = _reference(x, weight, bias, dilation=dilation)

    # Exact-precision path (f32 MXU inputs) -> tight tolerance.
    out_f32 = same_pad_conv(x, weight, bias, dilation=dilation,
                            compute_dtype=jnp.float32)
    out_f32 = jax.block_until_ready(out_f32)
    assert out_f32.shape == ref.shape, (out_f32.shape, ref.shape)
    assert jnp.allclose(out_f32, ref, atol=1e-5, rtol=1e-5), "f32 mismatch"

    # Fast path (bf16 MXU inputs, f32 accumulate) -> looser tolerance.
    out_bf16 = same_pad_conv(x, weight, bias, dilation=dilation)
    out_bf16 = jax.block_until_ready(out_bf16)
    assert out_bf16.shape == ref.shape, (out_bf16.shape, ref.shape)
    assert jnp.allclose(out_bf16, ref, atol=5e-2, rtol=5e-2), "bf16 mismatch"

    print("KERNEL_OK")
</pallas_src>

<mosaic_0001>
module attributes {stable_mosaic.version = 11 : i64} {
  func.func @_same_pad_conv_kernel(%arg0: i32, %arg1: i32, %arg2: i32, %arg3: memref<1x1x16x132xf32, #tpu.memory_space<vmem>>, %arg4: memref<8x48xf32, #tpu.memory_space<vmem>>, %arg5: memref<8x1xf32, #tpu.memory_space<vmem>>, %arg6: memref<1x8x128xf32, #tpu.memory_space<vmem>>) attributes {dimension_semantics = [#tpu.dimension_semantics<parallel>, #tpu.dimension_semantics<parallel>, #tpu.dimension_semantics<parallel>], iteration_bounds = array<i64: 2, 1, 1>, scalar_prefetch = 0 : i64, scratch_operands = 0 : i64, tpu.core_type = #tpu.core_type<tc>, window_params = [{transform_indices = @transform_0, window_bounds = array<i64: 1, 1, 16, 132>}, {transform_indices = @transform_1, window_bounds = array<i64: 8, 48>}, {transform_indices = @transform_2, window_bounds = array<i64: 8, 1>}, {transform_indices = @transform_3, window_bounds = array<i64: 1, 8, 128>}]} {
    %c0 = arith.constant 0 : index
    %c0_0 = arith.constant 0 : index
    %c0_1 = arith.constant 0 : index
    %c0_2 = arith.constant 0 : index
    %0 = vector.load %arg3[%c0, %c0_0, %c0_1, %c0_2] : memref<1x1x16x132xf32, #tpu.memory_space<vmem>>, vector<1x1x16x132xf32>
    %1 = vector.shape_cast %0 : vector<1x1x16x132xf32> to vector<16x132xf32>
    %2 = vector.extract_strided_slice %1 {offsets = [0, 0], sizes = [16, 128], strides = [1, 1]} : vector<16x132xf32> to vector<16x128xf32>
    %3 = vector.extract_strided_slice %1 {offsets = [0, 2], sizes = [16, 128], strides = [1, 1]} : vector<16x132xf32> to vector<16x128xf32>
    %4 = vector.extract_strided_slice %1 {offsets = [0, 4], sizes = [16, 128], strides = [1, 1]} : vector<16x132xf32> to vector<16x128xf32>
    %5 = tpu.concatenate %2, %3, %4 in 0 : vector<16x128xf32>, vector<16x128xf32>, vector<16x128xf32> -> vector<48x128xf32>
    %c0_3 = arith.constant 0 : index
    %c0_4 = arith.constant 0 : index
    %6 = vector.load %arg4[%c0_3, %c0_4] : memref<8x48xf32, #tpu.memory_space<vmem>>, vector<8x48xf32>
    %cst = arith.constant dense<0.000000e+00> : vector<8x128xf32>
    %7 = tpu.matmul %6, %5, %cst {dimension_numbers = #tpu.dot_dimension_numbers<[1], [0], [0], [1], [0, 0, 1, 1], [], []>} : vector<8x48xf32>, vector<48x128xf32>, vector<8x128xf32> -> vector<8x128xf32>
    %c0_5 = arith.constant 0 : index
    %c0_6 = arith.constant 0 : index
    %8 = vector.load %arg5[%c0_5, %c0_6] : memref<8x1xf32, #tpu.memory_space<vmem>>, vector<8x1xf32>
    %9 = vector.broadcast %8 : vector<8x1xf32> to vector<8x128xf32>
    %10 = arith.addf %7, %9 : vector<8x128xf32>
    %c0_7 = arith.constant 0 : index
    %c0_8 = arith.constant 0 : index
    %c0_9 = arith.constant 0 : index
    %11 = vector.load %arg6[%c0_7, %c0_8, %c0_9] : memref<1x8x128xf32, #tpu.memory_space<vmem>>, vector<1x8x128xf32>
    %12 = vector.shape_cast %11 : vector<1x8x128xf32> to vector<8x128xf32>
    %13 = vector.shape_cast %10 : vector<8x128xf32> to vector<1x8x128xf32>
    tpu.vector_store %arg6[%c0_7, %c0_8, %c0_9], %13 {strides = array<i32>} : memref<1x8x128xf32, #tpu.memory_space<vmem>>, vector<1x8x128xf32>,
    return
  }
  func.func @transform_0(%arg0: i32, %arg1: i32, %arg2: i32) -> (i32, i32, i32, i32) {
    %c0_i32 = arith.constant 0 : i32
    %c0_i32_0 = arith.constant 0 : i32
    %c0_i32_1 = arith.constant 0 : i32
    return %arg0, %arg1, %c0_i32, %c0_i32_0 : i32, i32, i32, i32
  }
  func.func @transform_1(%arg0: i32, %arg1: i32, %arg2: i32) -> (i32, i32) {
    %c0_i32 = arith.constant 0 : i32
    %c0_i32_0 = arith.constant 0 : i32
    return %arg2, %c0_i32 : i32, i32
  }
  func.func @transform_2(%arg0: i32, %arg1: i32, %arg2: i32) -> (i32, i32) {
    %c0_i32 = arith.constant 0 : i32
    %c0_i32_0 = arith.constant 0 : i32
    return %arg2, %c0_i32 : i32, i32
  }
  func.func @transform_3(%arg0: i32, %arg1: i32, %arg2: i32) -> (i32, i32, i32) {
    %c0_i32 = arith.constant 0 : i32
    return %arg0, %arg2, %arg1 : i32, i32, i32
  }
}

</mosaic_0001>

<bundles_post_ra>
// kernel: tpu_custom_call.1
= control target key start
LH: loop header
LB: loop body
LE: loop exit
PB: predicated region body
PF: predicated region fallthrough
CT: control target
= control target key end

     0   :  { %8 = vsyncpa [#allocation3], 0  ;;  %s962_s0 = inlined_call_operand.hbm [shape: f32[2,1,16,132], index: 0, kind: input, shape index: {}]   ;;  %s963_s1 = inlined_call_operand.vmem [shape: f32[8,48], index: 1, kind: input, shape index: {}]   ;;  %s964_s2 = inlined_call_operand.vmem [shape: f32[8,1], index: 2, kind: input, shape index: {}]   ;;  %s965_s3 = inlined_call_operand.hbm [shape: f32[2,8,128], index: 3, kind: output, shape index: {}]  }
   0x1   :  { %10 = vsyncpa [#allocation3 + $0x1], 0 }
   0x2   :  { %11 = vsyncpa [#allocation4], 0 }
   0x3   :  { %13 = vsyncpa [#allocation4 + $0x1], 0  ;;  %s782_s12 = smov 0   ;;  %s784_s13 = smov 0  }
   0x4   :  { %s786_s14 = smov 0   ;;  %s788_s15 = smov 0  }
   0x5   :  { %s790_s16 = smov 0   ;;  %s792_s17 = smov 0  }
   0x6 LB: > { %s498_s18 = sadd.s32 4294967295, %s750_s17   ;;  %s499_s19 = sadd.s32 4294967294, %s750_s17   ;;  %s750_s17 = sphi %s792_s17, %s19_s17   ;;  %s746_s16 = sphi %s790_s16, %s980_s16   ;;  %s742_s15 = sphi %s788_s15, %s979_s15   ;;  %s738_s14 = sphi %s786_s14, %s978_s14   ;;  %s734_s13 = sphi %s784_s13, %s977_s13   ;;  %s730_s12 = sphi %s782_s12, %s976_s12  }
   0x7   : > { %s38_s20 = sadd.s32 1, %s746_s16  ;;  %s47_s21 = sadd.s32 1, %s738_s14 }
   0x8   : > { %p40_p0 = scmp.ge.s32.totalorder %s38_s20, 2  ;;  %p54_p1 = scmp.ne.s32.totalorder %s738_s14, %s734_s13 }
   0x9   : > { %p55_p2 = scmp.eq.s32.totalorder %s750_s17, 0  ;;  %p60_p3 = scmp.ne.s32.totalorder %s734_s13, %s730_s12 }
   0xa   : > { %s982_s20 = smov (%p40_p0, %s38_s20), 0  ;;  %p61_p5 = scmp.eq.s32.totalorder %s498_s18, 0 }
   0xb   : > { %p823_p4 = por %p55_p2, %p54_p1  ;;  %s42_s23 = ssub.s32 %s746_s16, %s982_s20 }
   0xc   : > { %p140_p6 = scmp.eq.s32.totalorder %s498_s18, 1  ;;  %p45_p7 = scmp.eq.s32.totalorder %s42_s23, 0 }
   0xd   : > { %p829_p8 = por %p61_p5, %p60_p3  ;;  %p146_p10 = scmp.eq.s32.totalorder %s499_s19, 1 }
   0xe   : > { %p833_p9 = por %p140_p6, %p54_p1  ;;  %p559_p13 = scmp.lt.s32.totalorder %s750_s17, 2 }
   0xf   : > { %s838_s26 = scalar_select %p45_p7, %s738_s14, %s47_s21  }
  0x10   : > { %s969_s25 = scalar_select %p833_p9, 1, 0 }
  0x11   : > { %p840_p11 = por %p146_p10, %p60_p3  ;;  %s180_s28 = sand.u32 1, %s738_s14  }
  0x12   : > { %s504_s29 = sshll.u32 %s180_s28, 5  ;;  %s515_s30 = sshll.u32 %s746_s16, 9 }
  0x13   : > { %s970_s27 = scalar_select %p840_p11, 1, 0 }
  0x14   : > { %s851_s6 = scalar_lea.hbm %s962_s0, %s515_s30  ;;  %s184_s7 = scalar_lea.vmem [#allocation2], %s504_s29 }
  0x15   : > { %s193_s8 = sshll.u32 %s184_s7, 4  ;;  %p857_p0 = pnand %p559_p13, %p823_p4  ;;  %s853_s8 = int_to_ptr.vmem [resolvable:$true] %s193_s8 }
  0x16   : > { %s862_s10 = scalar_lea.sflag [#allocation3], %s180_s28  ;;  %s638_s11 = scalar_lea.hbm %s851_s6, 512 }
  0x17   : > { %p639_p2 = scmp.ne.s32.totalorder %s851_s6, %s638_s11  ;;  %p640_p3 = pneg %p857_p0 }
  0x18   : > { %s643_s21 = scalar_lea.hbm %s962_s0, 1024  ;;  %p644_p4 = scmp.lt.u32.totalorder %s851_s6, %s962_s0 }
  0x19   : > { %p641_p5 = pnand %p640_p3, %p639_p2  ;;  %p645_p7 = scmp.lt.u32.totalorder %s643_s21, %s638_s11 }
  0x1a   : > { %p647_p13 = scmp.lt.u32.totalorder %s638_s11, %s851_s6 }
  0x1b   : > { %p642_p6 = pneg %p641_p5  ;;  %p646_p10 = por %p645_p7, %p644_p4 }
  0x1d   : > { %p648_p12 = por %p647_p13, %p646_p10 }
  0x1f   : > { %p649_p1 = pnand %p648_p12, %p642_p6 }
  0x21   : > { %652 = shalt.err (!%p649_p1)
}
  0x22   : > { %s653_s28 = scalar_lea.vmem %s853_s8, 512  ;;  %s752_s29 = smov [#allocation2]  }
  0x23   : > { %p654_p2 = scmp.ne.s32.totalorder %s853_s8, %s653_s28  ;;  %s658_s30 = sshll.u32 %s752_s29, 4  ;;  %s659_s30 = int_to_ptr.vmem [resolvable:$false] %s658_s30 }
  0x24   : > { %s660_s4 = scalar_lea.vmem %s659_s30, 1024  ;;  %p661_p9 = scmp.lt.s32.totalorder %s853_s8, %s659_s30 }
  0x25   : > { %p656_p5 = pnand %p654_p2, %p640_p3  ;;  %p662_p4 = scmp.lt.s32.totalorder %s660_s4, %s653_s28 }
  0x27   : > { %p657_p11 = pneg %p656_p5  ;;  %p663_p7 = por %p662_p4, %p661_p9 }
  0x29   : > { %p664_p10 = pnand %p663_p7, %p657_p11 }
  0x2b   : > { %667 = shalt.err (!%p664_p10)
}
  0x2c   : > { %s753_s5 = smov 256   ;;  %s754_s7 = smov 16  }
  0x2d   : > { %554 = dma.hbm_to_vmem [thread:$0]  (!%p857_p0), %s851_s6, 512, %s853_s8, %s862_s10, %s753_s5, %s753_s5, %s754_s7  }
  0x2e   : > { %p201_p12 = scmp.lt.s32.totalorder %s750_s17, 3  ;;  %p972_p1 = scmp.ge.s32.totalorder %s750_s17, 1 }
  0x30   : > { %p202_p3 = pnand %p972_p1, %p201_p12 }
  0x31   : > { %s894_s11 = sand.u32 (!%p202_p3), 1, %s734_s13  }
  0x32   : > { %205 = sbr.rel (%p202_p3) target bundleno = 420 (0x1a4), region = 32  ;;  %s508_s18 = sshll.u32 (!%p202_p3), %s894_s11, 5 }
  0x33   : > { %s208_s19 = scalar_lea.sflag (!%p202_p3), [#allocation3], %s894_s11  ;;  %s211_s21 = scalar_lea.vmem (!%p202_p3), [#allocation2], %s508_s18 }
  0x39   : > { %721 = dma.done.wait (%p829_p8), %s208_s19, 512  }
  0x3a   : > { %723 = vsyncadd (%p829_p8), %s208_s19, 4294966784  ;;  %v755_v0 = vmov 0.0|0.0   ;;  %v250_v1 = vld [vmem:[%s211_s21] sm:$0xff]  ;;  %v251_v2 = vld [vmem:[%s211_s21 + $0x8] sm:$0xff]  ;;  %s756_s6 = smov 124   ;;  %s757_s8 = smov 126  }
  0x3b   : > { %538 = vmatprep.subr.bf16.mxu0 %v755_v0  ;;  %v252_v3 = vld [vmem:[%s211_s21 + $0x10] sm:$0xff]  ;;  %v627_v4 = vpack.i.bf16 %v251_v2, %v250_v1  ;;  %v253_v5 = vld [vmem:[%s211_s21 + $0x18] sm:$0xff]  ;;  %vm758_vm0 = vmmov 0   ;;  %v759_v8 = vmov 0.0   ;;  %v760_v9 = vmov 0   ;;  %v285_v10 = vld [vmem:[%s964_s2] sm:$0xff] }
  0x3c   : > { %v539_v6 = vpack.c.bf16 %v252_v3, %v250_v1  ;;  %v632_v7 = vpack.i.bf16 %v253_v5, %v252_v3  ;;  %535 = vmatprep.mubr.msk.f32.mxu0 %vm758_vm0, %v759_v8  ;;  %637 = vset.pattern.permute.xlu0 %v760_v9  ;;  %vm266_vm1 = vcmask 1031168   ;;  %vm279_vm2 = vcmask 1014784   ;;  %v284_v29 = vld [vmem:[%s963_s1] sm:$0xff]  ;;  %s509_s23 = sshll.u32 %s894_s11, 3  ;;  %s512_s28 = sshll.u32 %s742_s15, 7 }
  0x3d   : > { %628 = vrot.lane.b32.xlu1 %v627_v4, %s756_s6  ;;  %618 = vrot.lane.b32.xlu0 %v627_v4, %s757_s8  ;;  %vm291_vm3 = vcmask 392192   ;;  %s241_s29 = scalar_lea.vmem [#allocation5], %s509_s23  ;;  %s913_s7 = scalar_lea.hbm %s965_s3, %s512_s28 }
  0x3e   : > { %540 = vmatpush3.bf16.msra.mxu0 %v539_v6  ;;  %s382_s30 = sshll.u32 %s241_s29, 4  ;;  %s367_s18 = scalar_lea.sflag [#allocation4], %s894_s11  ;;  %s915_s30 = int_to_ptr.vmem [resolvable:$true] %s382_s30 }
  0x3f   : > { %541 = vmatprep.subr.bf16.mxu0 %v755_v0  ;;  %s668_s19 = scalar_lea.vmem %s915_s30, 128  ;;  %p973_p9 = scmp.ne.s32.totalorder %s969_s25, 0 }
  0x40   : > { %p669_p8 = scmp.ne.s32.totalorder %s915_s30, %s668_s19  ;;  %s761_s15 = smov [#allocation5]  }
  0x41   : > { %633 = vrot.lane.b32.xlu1 %v632_v7, %s756_s6  ;;  %623 = vrot.lane.b32.xlu0 %v632_v7, %s757_s8  ;;  %s672_s21 = sshll.u32 %s761_s15, 4  ;;  %s673_s21 = int_to_ptr.vmem [resolvable:$false] %s672_s21 }
  0x42   : > { %p670_p11 = pnand %p669_p8, %p973_p9  ;;  %s674_s6 = scalar_lea.vmem %s673_s21, 256 }
  0x43   : > { %p675_p6 = scmp.lt.s32.totalorder %s915_s30, %s673_s21  ;;  %p676_p13 = scmp.lt.s32.totalorder %s674_s6, %s668_s19 }
  0x44   : > { %p671_p0 = pneg %p670_p11 }
  0x45   : > { %288 = vperm.xlu0 %637, %v285_v10   ;;  %p677_p2 = por %p676_p13, %p675_p6 }
  0x47   : > { %p678_p5 = pnand %p677_p2, %p671_p0 }
  0xaf   : > { %v629_v11 = vpop.permute.xlu1 %628  ;;  %v619_v12 = vpop.permute.xlu0 %618 }
  0xb0   : > { %v621_v13 = vunpack.i.h.bf16 %v619_v12  ;;  %v620_v14 = vunpack.i.l.bf16 %v619_v12  ;;  %v631_v15 = vunpack.i.h.bf16 %v629_v11  ;;  %v630_v16 = vunpack.i.l.bf16 %v629_v11 }
  0xb2   : > { %v267_v23 = vsel %vm266_vm1, %v620_v14, %v621_v13  ;;  %v280_v26 = vsel %vm279_vm2, %v630_v16, %v631_v15 }
  0xb3   : > { %v634_v17 = vpop.permute.xlu1 %633  ;;  %v624_v18 = vpop.permute.xlu0 %623 }
  0xb4   : > { %v636_v19 = vunpack.i.h.bf16 %v634_v17  ;;  %v635_v20 = vunpack.i.l.bf16 %v634_v17  ;;  %v626_v21 = vunpack.i.h.bf16 %v624_v18  ;;  %v625_v22 = vunpack.i.l.bf16 %v624_v18 }
  0xb6   : > { %v268_v24 = vsel %vm266_vm1, %v625_v22, %v626_v21  ;;  %v281_v27 = vsel %vm279_vm2, %v635_v20, %v636_v19 }
  0xb7   : > { %v542_v25 = vpack.c.bf16 %v268_v24, %v267_v23  ;;  %v545_v28 = vpack.c.bf16 %v281_v27, %v280_v26 }
  0xb9   : > { %543 = vmatpush3.bf16.msra.mxu0 %v542_v25 }
  0xba   : > { %544 = vmatprep.subr.bf16.mxu0 %v755_v0 }
  0xbd   : > { %546 = vmatpush3.bf16.msra.mxu0 %v545_v28 }
  0xc0   : > { %536 = vmatmul.mubr.msk.f32.vlgmr.msra.gmra.mrb[0].mxu0 %vm291_vm3, %v284_v29 }
  0xc4   : > { %v289_v30 = vpop.permute.xlu0 %288 }
 0x193   : > { %v361_v31 = vpop.f32.mrb[0].mxu0 }
 0x194   : > { %v362_v32 = vadd.f32 %v361_v31, %v289_v30  ;;  %v537_v33 = vpop.f32.mrb[1].mxu0 }
 0x196   : > { %365 = vst [vmem:[%s241_s29] sm:$0xff] %v362_v32 }
 0x197   : > { %681 = shalt.err (!%p678_p5)
}
 0x198   : > { %s682_s11 = scalar_lea.hbm %s913_s7, 128  ;;  %s686_s9 = scalar_lea.hbm %s965_s3, 256 }
 0x199   : > { %p683_p4 = scmp.ne.s32.totalorder %s913_s7, %s682_s11  ;;  %p687_p12 = scmp.lt.u32.totalorder %s913_s7, %s965_s3 }
 0x19a   : > { %p688_p1 = scmp.lt.u32.totalorder %s686_s9, %s682_s11  ;;  %p690_p8 = scmp.lt.u32.totalorder %s682_s11, %s913_s7 }
 0x19b   : > { %p684_p7 = pnand %p683_p4, %p973_p9 }
 0x19c   : > { %p689_p3 = por %p688_p1, %p687_p12 }
 0x19d   : > { %p685_p10 = pneg %p684_p7 }
 0x19e   : > { %p691_p11 = por %p690_p8, %p689_p3 }
 0x1a0   : > { %p692_p0 = pnand %p691_p11, %p685_p10 }
 0x1a2   : > { %695 = shalt.err (!%p692_p0)
}
 0x1a3   : > { %549 = dma.vmem_to_hbm [thread:$0]  (%p973_p9), %s915_s30, 128, %s913_s7, %s367_s18  }
 0x1a4 PF: > { %s394_s23 = sand.u32 1, %s730_s12   ;;  %p974_p6 = scmp.ne.s32.totalorder %s970_s27, 0 }
 0x1a5   : > { %p975_p13 = scmp.ge.s32.totalorder %s750_s17, 2  ;;  %s395_s28 = scalar_lea.sflag [#allocation4], %s394_s23 }
 0x1a7   : > { %p556_p2 = pnand %p975_p13, %p974_p6 }
 0x1a9   : > { %725 = dma.done.wait (!%p556_p2), %s395_s28, 128  }
 0x1aa   : > { %727 = vsyncadd (!%p556_p2), %s395_s28, 4294967168  ;;  %s19_s17 = sadd.s32 1, %s750_s17   ;;  %s976_s12 = smov %s734_s13 }
 0x1ab   : > { %p16_p5 = scmp.ge.s32.totalorder %s19_s17, 4   ;;  %s977_s13 = smov %s738_s14 }
 0x1ac   : > { %s978_s14 = smov %s838_s26  ;;  %s979_s15 = smov %s746_s16 }
 0x1ad   : > { %s980_s16 = smov %s982_s20  ;;  %18 = sbr.rel (!%p16_p5) target bundleno = 6 (0x6), region = 83 }
 0x1b4   :  { %400 = vsyncpa [#allocation3], 1 }
 0x1b5   :  { %402 = vsyncpa [#allocation3 + $0x1], 1 }
 0x1b6   :  { %403 = vsyncpa [#allocation4], 1 }
 0x1b7   :  { %405 = vsyncpa [#allocation4 + $0x1], 1 }

</bundles_post_ra>
